<compile_context>
chip_gen: v7x
topology: tpu7x:2x2x1
jax: 0.10.0
libtpu: 0.0.40
codegen_flags: <defaults>
</compile_context>

<pallas_src>
import functools

import jax
import jax.numpy as jnp
from jax.experimental import pallas as pl
from jax.experimental.pallas import tpu as pltpu


def _round_up(a: int, b: int) -> int:
    return (a + b - 1) // b * b


def _maybe_pad2d(a, rows, cols):
    r, c = a.shape
    if r == rows and c == cols:
        return a  # skip the HBM copy when already tile-aligned
    return jnp.pad(a, ((0, rows - r), (0, cols - c)))


def _unembed_kernel_single_k(x_ref, w_ref, b_ref, o_ref):
    # Full contraction in one MXU pass: no accumulator round-trip through VMEM.
    o_ref[...] = (
        jnp.dot(x_ref[...], w_ref[...], preferred_element_type=jnp.float32)
        + b_ref[...].astype(jnp.float32)
    ).astype(o_ref.dtype)


def _unembed_kernel_multi_k(x_ref, w_ref, b_ref, o_ref, acc_ref):
    k = pl.program_id(2)

    @pl.when(k == 0)
    def _():
        acc_ref[...] = jnp.zeros_like(acc_ref)

    acc_ref[...] += jnp.dot(
        x_ref[...], w_ref[...], preferred_element_type=jnp.float32
    )

    @pl.when(k == pl.num_programs(2) - 1)
    def _():
        o_ref[...] = (acc_ref[...] + b_ref[...].astype(jnp.float32)).astype(
            o_ref.dtype
        )


@functools.partial(jax.jit, static_argnames=("tile_m", "tile_n", "tile_k"))
def unembed_forward(x, w_u, b_u, *, tile_m=256, tile_n=512, tile_k=1024):
    """x: [batch, position, d_residual] -> logits [batch, position, d_vocab]."""
    batch, pos, d_res = x.shape
    d_vocab = w_u.shape[1]

    m = batch * pos
    x2d = x.reshape(m, d_res)

    # Clamp tiles to the (aligned) problem dims: big shapes get big MXU tiles,
    # tiny demo shapes still satisfy the (8, 128) block constraints.
    tm = min(tile_m, _round_up(m, 8))
    tk = min(tile_k, _round_up(d_res, 8))
    tn = min(tile_n, _round_up(d_vocab, 128))

    mp = _round_up(m, tm)
    kp = _round_up(d_res, tk)
    vp = _round_up(d_vocab, tn)

    # Zero-pad ragged edges (zeros in K are exact; extra rows / vocab columns
    # are sliced off after the call).  No-op when already aligned.
    x_p = _maybe_pad2d(x2d, mp, kp)
    w_p = _maybe_pad2d(w_u, kp, vp)
    b_p = _maybe_pad2d(b_u.reshape(1, d_vocab), 1, vp)

    itemsize = jnp.dtype(x.dtype).itemsize
    cost = pl.CostEstimate(
        flops=2 * mp * kp * vp,
        transcendentals=0,
        bytes_accessed=(mp * kp + kp * vp + vp + mp * vp) * itemsize,
    )

    single_k = kp == tk

    if single_k:
        grid = (mp // tm, vp // tn)
        grid_spec = pltpu.PrefetchScalarGridSpec(
            num_scalar_prefetch=0,
            grid=grid,
            in_specs=[
                pl.BlockSpec((tm, tk), lambda i, j: (i, 0)),   # x rows
                pl.BlockSpec((tk, tn), lambda i, j: (0, j)),   # W_U tile
                pl.BlockSpec((1, tn), lambda i, j: (0, j)),    # b_U tile
            ],
            out_specs=pl.BlockSpec((tm, tn), lambda i, j: (i, j)),
            scratch_shapes=[],
        )
        kernel = _unembed_kernel_single_k
        dim_sem = ("parallel", "parallel")
        vmem_est = 2 * (tm * tk + tk * tn + tn + tm * tn) * itemsize
    else:
        grid = (mp // tm, vp // tn, kp // tk)
        grid_spec = pltpu.PrefetchScalarGridSpec(
            num_scalar_prefetch=0,
            grid=grid,
            in_specs=[
                pl.BlockSpec((tm, tk), lambda i, j, k: (i, k)),   # x rows
                pl.BlockSpec((tk, tn), lambda i, j, k: (k, j)),   # W_U tile
                pl.BlockSpec((1, tn), lambda i, j, k: (0, j)),    # b_U tile
            ],
            out_specs=pl.BlockSpec((tm, tn), lambda i, j, k: (i, j)),
            scratch_shapes=[pltpu.VMEM((tm, tn), jnp.float32)],
        )
        kernel = _unembed_kernel_multi_k
        dim_sem = ("parallel", "parallel", "arbitrary")
        vmem_est = (
            2 * (tm * tk + tk * tn + tn + tm * tn) * itemsize + tm * tn * 4
        )

    # BlockSpec double-buffers every operand/output; leave headroom but cap at
    # 64 MiB so the same code runs on v7x (64 MiB physical VMEM per TC).
    vmem_limit = int(min(max(2 * vmem_est, 32 * 1024 * 1024), 64 * 1024 * 1024))

    out_p = pl.pallas_call(
        kernel,
        out_shape=jax.ShapeDtypeStruct((mp, vp), x.dtype),
        grid_spec=grid_spec,
        compiler_params=pltpu.CompilerParams(
            dimension_semantics=dim_sem,
            vmem_limit_bytes=vmem_limit,
        ),
        cost_estimate=cost,
    )(x_p, w_p, b_p)

    return out_p[:m, :d_vocab].reshape(batch, pos, d_vocab)


def _reference_unembed(x, w_u, b_u):
    return jnp.einsum("bpd,dv->bpv", x, w_u) + b_u


if __name__ == "__main__":
    # Config (cfg.d_residual, cfg.d_vocab, cfg.init_range) chosen small.
    batch, seq = 2, 8
    d_residual, d_vocab = 32, 512
    init_range = 0.02

    key = jax.random.PRNGKey(0)
    k_x, k_w = jax.random.split(key, 2)

    # Deterministic parameter init matching nn.init.normal_(std=init_range)
    # and zero bias (b_U is a non-trainable zero vector in the module).
    w_u = init_range * jax.random.normal(k_w, (d_residual, d_vocab), jnp.float32)
    b_u = jnp.zeros((d_vocab,), jnp.float32)
    x = jax.random.normal(k_x, (batch, seq, d_residual), jnp.float32)

    out = unembed_forward(x, w_u, b_u)
    out = jax.block_until_ready(out)

    ref = _reference_unembed(x, w_u, b_u)
    assert out.shape == (batch, seq, d_vocab)
    assert jnp.allclose(out, ref, atol=1e-5, rtol=1e-5), "mismatch vs reference"

    print("KERNEL_OK")
</pallas_src>

<mosaic_0001>
module attributes {stable_mosaic.version = 11 : i64} {
  func.func @_unembed_kernel_single_k(%arg0: i32, %arg1: i32, %arg2: memref<16x32xf32, #tpu.memory_space<vmem>>, %arg3: memref<32x512xf32, #tpu.memory_space<vmem>>, %arg4: memref<1x512xf32, #tpu.memory_space<vmem>>, %arg5: memref<16x512xf32, #tpu.memory_space<vmem>>) attributes {dimension_semantics = [#tpu.dimension_semantics<parallel>, #tpu.dimension_semantics<parallel>], iteration_bounds = array<i64: 1, 1>, scalar_prefetch = 0 : i64, scratch_operands = 0 : i64, tpu.core_type = #tpu.core_type<tc>, window_params = [{transform_indices = @transform_0, window_bounds = array<i64: 16, 32>}, {transform_indices = @transform_1, window_bounds = array<i64: 32, 512>}, {transform_indices = @transform_2, window_bounds = array<i64: 1, 512>}, {transform_indices = @transform_3, window_bounds = array<i64: 16, 512>}]} {
    %c0 = arith.constant 0 : index
    %c0_0 = arith.constant 0 : index
    %0 = vector.load %arg2[%c0, %c0_0] : memref<16x32xf32, #tpu.memory_space<vmem>>, vector<16x32xf32>
    %c0_1 = arith.constant 0 : index
    %c0_2 = arith.constant 0 : index
    %1 = vector.load %arg3[%c0_1, %c0_2] : memref<32x512xf32, #tpu.memory_space<vmem>>, vector<32x512xf32>
    %cst = arith.constant dense<0.000000e+00> : vector<16x512xf32>
    %2 = tpu.matmul %0, %1, %cst {dimension_numbers = #tpu.dot_dimension_numbers<[1], [0], [0], [1], [0, 0, 1, 1], [], []>} : vector<16x32xf32>, vector<32x512xf32>, vector<16x512xf32> -> vector<16x512xf32>
    %c0_3 = arith.constant 0 : index
    %c0_4 = arith.constant 0 : index
    %3 = vector.load %arg4[%c0_3, %c0_4] : memref<1x512xf32, #tpu.memory_space<vmem>>, vector<1x512xf32>
    %4 = vector.broadcast %3 : vector<1x512xf32> to vector<16x512xf32>
    %5 = arith.addf %2, %4 : vector<16x512xf32>
    %c0_5 = arith.constant 0 : index
    %c0_6 = arith.constant 0 : index
    %6 = vector.load %arg5[%c0_5, %c0_6] : memref<16x512xf32, #tpu.memory_space<vmem>>, vector<16x512xf32>
    tpu.vector_store %arg5[%c0_5, %c0_6], %5 {strides = array<i32>} : memref<16x512xf32, #tpu.memory_space<vmem>>, vector<16x512xf32>,
    return
  }
  func.func @transform_0(%arg0: i32, %arg1: i32) -> (i32, i32) {
    %c0_i32 = arith.constant 0 : i32
    %c0_i32_0 = arith.constant 0 : i32
    return %arg0, %c0_i32 : i32, i32
  }
  func.func @transform_1(%arg0: i32, %arg1: i32) -> (i32, i32) {
    %c0_i32 = arith.constant 0 : i32
    %c0_i32_0 = arith.constant 0 : i32
    return %c0_i32, %arg1 : i32, i32
  }
  func.func @transform_2(%arg0: i32, %arg1: i32) -> (i32, i32) {
    %c0_i32 = arith.constant 0 : i32
    %c0_i32_0 = arith.constant 0 : i32
    return %c0_i32, %arg1 : i32, i32
  }
  func.func @transform_3(%arg0: i32, %arg1: i32) -> (i32, i32) {
    %c0_i32 = arith.constant 0 : i32
    return %arg0, %arg1 : i32, i32
  }
}

</mosaic_0001>

<bundles_post_ra>
// kernel: unembed_forward.1
= control target key start
LH: loop header
LB: loop body
LE: loop exit
PB: predicated region body
PF: predicated region fallthrough
CT: control target
= control target key end

     0   :  { %8 = vsyncpa [#allocation3], 0  ;;  %s443_s0 = inlined_call_operand.hbm [shape: f32[16,32], index: 0, kind: input, shape index: {}]   ;;  %s444_s1 = inlined_call_operand.hbm [shape: f32[32,512], index: 1, kind: input, shape index: {}]   ;;  %s445_s2 = inlined_call_operand.vmem [shape: f32[1,512], index: 2, kind: input, shape index: {}]   ;;  %s446_s3 = inlined_call_operand.hbm [shape: f32[16,512], index: 3, kind: output, shape index: {}]  }
   0x1   :  { %9 = vsyncpa [#allocation6], 0 }
   0x2   :  { %10 = vsyncpa [#allocation4], 0  ;;  %s370_s12 = smov [#allocation2]   ;;  %s298_s16 = scalar_lea.hbm %s443_s0, 256 }
   0x3   :  { %s16_s13 = sshll.u32 %s370_s12, 4  ;;  %p299_p0 = scmp.ne.s32.totalorder %s443_s0, %s298_s16  ;;  %s17_s13 = int_to_ptr.vmem [resolvable:$true] %s16_s13 }
   0x4   :  { %p302_p1 = scmp.lt.u32.totalorder %s298_s16, %s443_s0 }
   0x6   :  { %p304_p2 = pnand %p302_p1, %p299_p0 }
   0x8   :  { %307 = shalt.err (!%p304_p2)
}
   0x9   :  { %s308_s21 = scalar_lea.vmem %s17_s13, 256  ;;  %p313_p4 = scmp.lt.s32.totalorder %s17_s13, %s17_s13 }
   0xa   :  { %p309_p3 = scmp.ne.s32.totalorder %s17_s13, %s308_s21  ;;  %p314_p5 = scmp.lt.s32.totalorder %s308_s21, %s308_s21 }
   0xc   :  { %p315_p6 = por %p314_p5, %p313_p4 }
   0xe   :  { %p316_p7 = pnand %p315_p6, %p309_p3 }
  0x10   :  { %319 = shalt.err (!%p316_p7)
}
  0x11   :  { %s371_s22 = smov 128   ;;  %s372_s23 = smov 8  }
  0x12   :  { %22 = dma.hbm_to_vmem [thread:$0]  %s443_s0, 256, %s17_s13, [#allocation3], %s371_s22, %s371_s22, %s372_s23  }
  0x13   :  { %s373_s26 = smov [#allocation5]   ;;  %s320_s30 = scalar_lea.hbm %s444_s1, 2048 }
  0x14   :  { %s28_s27 = sshll.u32 %s373_s26, 4  ;;  %p321_p8 = scmp.ne.s32.totalorder %s444_s1, %s320_s30  ;;  %s29_s27 = int_to_ptr.vmem [resolvable:$true] %s28_s27 }
  0x15   :  { %p324_p9 = scmp.lt.u32.totalorder %s320_s30, %s444_s1 }
  0x17   :  { %p326_p10 = pnand %p324_p9, %p321_p8 }
  0x19   :  { %329 = shalt.err (!%p326_p10)
}
  0x1a   :  { %s330_s8 = scalar_lea.vmem %s29_s27, 2048  ;;  %p335_p12 = scmp.lt.s32.totalorder %s29_s27, %s29_s27 }
  0x1b   :  { %p331_p11 = scmp.ne.s32.totalorder %s29_s27, %s330_s8  ;;  %p336_p13 = scmp.lt.s32.totalorder %s330_s8, %s330_s8 }
  0x1d   :  { %p337_p0 = por %p336_p13, %p335_p12 }
  0x1f   :  { %p338_p1 = pnand %p337_p0, %p331_p11 }
  0x21   :  { %341 = shalt.err (!%p338_p1)
}
  0x22   :  { %s374_s0 = smov 512   ;;  %s375_s9 = smov 32  }
  0x23   :  { %34 = dma.hbm_to_vmem [thread:$0]  %s444_s1, 2048, %s29_s27, [#allocation6], %s374_s0, %s374_s0, %s375_s9  }
  0x24   :  { %364 = dma.done.wait [#allocation3], 256  }
  0x25   :  { %365 = vsyncadd [#allocation3], 4294967040 }
  0x26   :  { %366 = dma.done.wait [#allocation6], 2048  }
  0x27   :  { %367 = vsyncadd [#allocation6], 4294965248  ;;  %v376_v0 = vmov 0.0   ;;  %v46_v1 = vld [vmem:[#allocation5 + $0x8] sm:$0xff]  ;;  %v48_v3 = vld [vmem:[#allocation5 + $0x18] sm:$0xff]  ;;  %vm83_vm0 = vcmask 261120   ;;  %v63_v27 = vlaneseq }
  0x28   :  { %154 = vmatprep.mubr.f32.mxu0 %v376_v0  ;;  %231 = vmatprep.mubr.f32.mxu1 %v376_v0  ;;  %v50_v2 = vld [vmem:[#allocation5 + $0x28] sm:$0xff]  ;;  %v52_v5 = vld [vmem:[#allocation5 + $0x38] sm:$0xff]  ;;  %v45_v6 = vld [vmem:[#allocation5] sm:$0xff] }
  0x29   :  { %v274_v4 = vpack.c.bf16 %v50_v2, %v46_v1  ;;  %v49_v7 = vld [vmem:[#allocation5 + $0x20] sm:$0xff]  ;;  %v282_v8 = vpack.c.bf16 %v52_v5, %v48_v3  ;;  %v47_v10 = vld [vmem:[#allocation5 + $0x10] sm:$0xff]  ;;  %v54_v12 = vld [vmem:[#allocation5 + $0x48] sm:$0xff]  ;;  %v64_v28 = vshrl.u32 %v63_v27, 7 }
  0x2a   :  { %v276_v9 = vpack.c.bf16 %v49_v7, %v45_v6  ;;  %v51_v11 = vld [vmem:[#allocation5 + $0x30] sm:$0xff]  ;;  %v58_v14 = vld [vmem:[#allocation5 + $0x68] sm:$0xff]  ;;  %v56_v15 = vld [vmem:[#allocation5 + $0x58] sm:$0xff] }
  0x2b   :  { %275 = vmatprep.subr.bf16.mxu0 %v274_v4  ;;  %v284_v13 = vpack.c.bf16 %v51_v11, %v47_v10  ;;  %v60_v16 = vld [vmem:[#allocation5 + $0x78] sm:$0xff]  ;;  %283 = vmatprep.subr.bf16.mxu1 %v282_v8  ;;  %v278_v17 = vpack.c.bf16 %v58_v14, %v54_v12  ;;  %v53_v19 = vld [vmem:[#allocation5 + $0x40] sm:$0xff]  ;;  %v55_v21 = vld [vmem:[#allocation5 + $0x50] sm:$0xff]  ;;  %v65_v29 = vsub.s32 0, %v64_v28  ;;  %v73_v31 = vsub.s32 2, %v64_v28 }
  0x2c   :  { %277 = vmatpush1.bf16.msra.mxu0 %v276_v9  ;;  %v286_v18 = vpack.c.bf16 %v60_v16, %v56_v15  ;;  %v57_v20 = vld [vmem:[#allocation5 + $0x60] sm:$0xff]  ;;  %v59_v23 = vld [vmem:[#allocation5 + $0x70] sm:$0xff]  ;;  %v44_v26 = vld [vmem:[#allocation2 + $0x8] sm:$0xff]  ;;  %v69_v32 = vsub.s32 1, %v64_v28  ;;  %v77_v33 = vsub.s32 3, %v64_v28 }
  0x2d   :  { %285 = vmatpush1.bf16.msra.mxu1 %v284_v13  ;;  %v280_v22 = vpack.c.bf16 %v57_v20, %v53_v19  ;;  %279 = vmatprep.subr.bf16.mxu0 %v278_v17  ;;  %v288_v24 = vpack.c.bf16 %v59_v23, %v55_v21  ;;  %v43_v25 = vld [vmem:[#allocation2] sm:$0xff] }
  0x2e   :  { %287 = vmatprep.subr.bf16.mxu1 %v286_v18  ;;  %v61_v30 = vld [vmem:[%s445_s2] sm:$0xf]  ;;  %s377_s2 = smov [#allocation7]  }
  0x2f   :  { %v66_v34 = vrot.slane %v61_v30, %v65_v29  ;;  %v74_v35 = vrot.slane %v61_v30, %v73_v31  ;;  %v70_v36 = vrot.slane %v61_v30, %v69_v32  ;;  %v78_v37 = vrot.slane %v61_v30, %v77_v33  ;;  %s257_s13 = sshll.u32 %s377_s2, 4  ;;  %s258_s13 = int_to_ptr.vmem [resolvable:$true] %s257_s13 }
  0x30   :  { %281 = vmatpush1.bf16.msra.mxu0 %v280_v22  ;;  %s342_s14 = scalar_lea.vmem %s258_s13, 1024  ;;  %p347_p3 = scmp.lt.s32.totalorder %s258_s13, %s258_s13 }
  0x31   :  { %289 = vmatpush1.bf16.msra.mxu1 %v288_v24  ;;  %p343_p2 = scmp.ne.s32.totalorder %s258_s13, %s342_s14  ;;  %p348_p4 = scmp.lt.s32.totalorder %s342_s14, %s342_s14 }
  0x33   :  { %270 = vmatmul.mubr.msk.f32.vlgmr.msra.gmra.mrb[0].mxu0 %vm83_vm0, %v43_v25  ;;  %p349_p5 = por %p348_p4, %p347_p3 }
  0x34   :  { %272 = vmatmul.mubr.msk.f32.vlgmr.msra.gmra.mrb[0].mxu1 %vm83_vm0, %v43_v25  ;;  %160 = vmatprep.mubr.f32.mxu0 %v376_v0 }
  0x35   :  { %237 = vmatprep.mubr.f32.mxu1 %v376_v0  ;;  %p350_p6 = pnand %p349_p5, %p343_p2 }
  0x37   :  { %271 = vmatmul.mubr.msk.f32.gmra.mrb[2].mxu0 %vm83_vm0, %v44_v26 }
  0x38   :  { %273 = vmatmul.mubr.msk.f32.gmra.mrb[2].mxu1 %vm83_vm0, %v44_v26 }
 0x106   :  { %v156_v38 = vpop.f32.mrb[0].mxu0 }
 0x107   :  { %v157_v39 = vadd.f32 %v156_v38, %v66_v34  ;;  %v233_v40 = vpop.f32.mrb[0].mxu1  ;;  %v158_v41 = vpop.f32.mrb[1].mxu0 }
 0x108   :  { %v234_v42 = vadd.f32 %v233_v40, %v74_v35  ;;  %v159_v43 = vadd.f32 %v158_v41, %v70_v36  ;;  %v235_v44 = vpop.f32.mrb[1].mxu1 }
 0x109   :  { %244 = vst [vmem:[#allocation7] sm:$0xff] %v157_v39  ;;  %v236_v45 = vadd.f32 %v235_v44, %v78_v37 }
 0x10a   :  { %246 = vst [vmem:[#allocation7 + $0x10] sm:$0xff] %v234_v42  ;;  %245 = vst [vmem:[#allocation7 + $0x8] sm:$0xff] %v159_v43  ;;  %v162_v46 = vpop.f32.mrb[2].mxu0 }
 0x10b   :  { %247 = vst [vmem:[#allocation7 + $0x18] sm:$0xff] %v236_v45  ;;  %v163_v47 = vadd.f32 %v162_v46, %v66_v34  ;;  %v239_v48 = vpop.f32.mrb[2].mxu1  ;;  %v164_v49 = vpop.f32.mrb[3].mxu0 }
 0x10c   :  { %v240_v50 = vadd.f32 %v239_v48, %v74_v35  ;;  %v165_v51 = vadd.f32 %v164_v49, %v70_v36  ;;  %v241_v52 = vpop.f32.mrb[3].mxu1 }
 0x10d   :  { %248 = vst [vmem:[#allocation7 + $0x20] sm:$0xff] %v163_v47  ;;  %v242_v53 = vadd.f32 %v241_v52, %v78_v37 }
 0x10e   :  { %250 = vst [vmem:[#allocation7 + $0x30] sm:$0xff] %v240_v50  ;;  %249 = vst [vmem:[#allocation7 + $0x28] sm:$0xff] %v165_v51 }
 0x10f   :  { %251 = vst [vmem:[#allocation7 + $0x38] sm:$0xff] %v242_v53 }
 0x110   :  { %353 = shalt.err (!%p350_p6)
}
 0x111   :  { %s354_s17 = scalar_lea.hbm %s446_s3, 1024 }
 0x112   :  { %p355_p7 = scmp.ne.s32.totalorder %s446_s3, %s354_s17  ;;  %p358_p8 = scmp.lt.u32.totalorder %s354_s17, %s446_s3 }
 0x114   :  { %p360_p9 = pnand %p358_p8, %p355_p7 }
 0x116   :  { %363 = shalt.err (!%p360_p9)
}
 0x117   :  { %263 = dma.vmem_to_hbm [thread:$0]  %s258_s13, 1024, %s446_s3, [#allocation4], %s374_s0, %s374_s0, %s375_s9  }
 0x118   :  { %368 = dma.done.wait [#allocation4], 1024  }
 0x119   :  { %369 = vsyncadd [#allocation4], 4294966272 }
 0x11a   :  { %267 = vsyncpa [#allocation3], 1 }
 0x11b   :  { %268 = vsyncpa [#allocation6], 1 }
 0x11c   :  { %269 = vsyncpa [#allocation4], 1 }

</bundles_post_ra>
